<compile_context>
chip_gen: v6e
topology: v6e:2x2x1
jax: 0.10.0
libtpu: 0.0.40
codegen_flags: <defaults>
</compile_context>

<pallas_src>
import jax
import jax.numpy as jnp
from jax.experimental import pallas as pl
from jax.experimental.pallas import tpu as pltpu


def _round_up(x, m):
    return (x + m - 1) // m * m


# ---------------------------------------------------------------------------
# Path 1: whole-slab kernel.  grid = (N,), one (C, HW) slab per step.
# One HBM read + one HBM write of x; pooling, MLP, sigmoid, multiply fused.
# ---------------------------------------------------------------------------
def _make_whole_slab_kernel(hw: int):
    inv_hw = 1.0 / float(hw)

    def kernel(x_ref, w1_ref, b1_ref, w2_ref, b2_ref, o_ref):
        x = x_ref[0]                                              # (C, HW)

        # Both reductions (and the final multiply) reuse the same loaded x.
        # Mosaic masks the unaligned lane tail of the reductions, so no
        # explicit mask / padding is needed here.
        max_pool = jnp.max(x, axis=-1, keepdims=True)             # (C, 1)
        avg_pool = jnp.sum(x, axis=-1, keepdims=True) * inv_hw    # (C, 1)

        # Tiny shared MLP (negligible FLOPs; sits on the per-step serial path).
        h_max = jnp.maximum(
            jnp.dot(w1_ref[...], max_pool,
                    preferred_element_type=jnp.float32) + b1_ref[...], 0.0)
        h_avg = jnp.maximum(
            jnp.dot(w1_ref[...], avg_pool,
                    preferred_element_type=jnp.float32) + b1_ref[...], 0.0)
        # mlp(max) + mlp(avg) = w2 @ (h_max + h_avg) + 2 * b2  (layer 2 linear)
        y = jnp.dot(w2_ref[...], h_max + h_avg,
                    preferred_element_type=jnp.float32) + 2.0 * b2_ref[...]
        scale = jax.nn.sigmoid(y)                                 # (C, 1)

        o_ref[0] = x * scale                                      # broadcast over HW

    return kernel


def _whole_slab_call(x_flat, w1, b1c, w2, b2c, vmem_limit):
    N, C, HW = x_flat.shape
    R = w1.shape[0]
    return pl.pallas_call(
        _make_whole_slab_kernel(HW),
        out_shape=jax.ShapeDtypeStruct((N, C, HW), x_flat.dtype),
        grid_spec=pltpu.PrefetchScalarGridSpec(
            num_scalar_prefetch=0,
            grid=(N,),
            in_specs=[
                pl.BlockSpec((1, C, HW), lambda n: (n, 0, 0)),
                # Constant weights / biases: same block every grid step.
                pl.BlockSpec((R, C), lambda n: (0, 0)),
                pl.BlockSpec((R, 1), lambda n: (0, 0)),
                pl.BlockSpec((C, R), lambda n: (0, 0)),
                pl.BlockSpec((C, 1), lambda n: (0, 0)),
            ],
            out_specs=pl.BlockSpec((1, C, HW), lambda n: (n, 0, 0)),
        ),
        compiler_params=pltpu.CompilerParams(
            dimension_semantics=("parallel",),
            vmem_limit_bytes=int(vmem_limit)),
    )(x_flat, w1, b1c, w2, b2c)


# ---------------------------------------------------------------------------
# Path 2: HW-tiled two-pass fallback (large C*HW, or forced).
# ---------------------------------------------------------------------------
def _make_pool_scale_kernel(hw: int, thw: int):
    inv_hw = 1.0 / float(hw)
    num_hw = (hw + thw - 1) // thw
    tail_len = hw - (num_hw - 1) * thw          # valid lanes in the last tile
    has_tail = tail_len != thw
    neg = float(jnp.finfo(jnp.float32).min)

    def kernel(x_ref, w1_ref, b1_ref, w2_ref, b2_ref, scale_ref,
               max_acc, sum_acc):
        h_idx = pl.program_id(1)
        is_tail = h_idx == num_hw - 1

        @pl.when(h_idx == 0)
        def _():
            max_acc[...] = jnp.full_like(max_acc, neg)
            sum_acc[...] = jnp.zeros_like(sum_acc)

        x = x_ref[0]                                              # (C, thw)

        def _accum(x_for_max, x_for_sum):
            max_acc[...] = jnp.maximum(
                max_acc[...], jnp.max(x_for_max, axis=-1, keepdims=True))
            sum_acc[...] = sum_acc[...] + jnp.sum(
                x_for_sum, axis=-1, keepdims=True)

        def _finalize():
            max_pool = max_acc[...]
            avg_pool = sum_acc[...] * inv_hw
            h_max = jnp.maximum(
                jnp.dot(w1_ref[...], max_pool,
                        preferred_element_type=jnp.float32) + b1_ref[...], 0.0)
            h_avg = jnp.maximum(
                jnp.dot(w1_ref[...], avg_pool,
                        preferred_element_type=jnp.float32) + b1_ref[...], 0.0)
            y = jnp.dot(w2_ref[...], h_max + h_avg,
                        preferred_element_type=jnp.float32) + 2.0 * b2_ref[...]
            scale_ref[0] = jax.nn.sigmoid(y)                      # (C, 1)

        if has_tail:
            # Explicit mask confined to the single tail tile (the partial
            # block's out-of-bounds region is undefined).
            @pl.when(jnp.logical_not(is_tail))
            def _():
                _accum(x, x)

            @pl.when(is_tail)
            def _():
                lane = jax.lax.broadcasted_iota(jnp.int32, x.shape, 1)
                valid = lane < tail_len
                _accum(jnp.where(valid, x, neg),
                       jnp.where(valid, x, 0.0))
                _finalize()
        else:
            _accum(x, x)

            @pl.when(is_tail)
            def _():
                _finalize()

    return kernel


def _pool_scale_call(x_flat, w1, b1c, w2, b2c, thw, vmem_limit):
    N, C, HW = x_flat.shape
    R = w1.shape[0]
    num_hw = (HW + thw - 1) // thw
    return pl.pallas_call(
        _make_pool_scale_kernel(HW, thw),
        out_shape=jax.ShapeDtypeStruct((N, C, 1), jnp.float32),
        grid_spec=pltpu.PrefetchScalarGridSpec(
            num_scalar_prefetch=0,
            grid=(N, num_hw),
            in_specs=[
                pl.BlockSpec((1, C, thw), lambda n, h: (n, 0, h)),
                pl.BlockSpec((R, C), lambda n, h: (0, 0)),
                pl.BlockSpec((R, 1), lambda n, h: (0, 0)),
                pl.BlockSpec((C, R), lambda n, h: (0, 0)),
                pl.BlockSpec((C, 1), lambda n, h: (0, 0)),
            ],
            out_specs=pl.BlockSpec((1, C, 1), lambda n, h: (n, 0, 0)),
            scratch_shapes=[pltpu.VMEM((C, 1), jnp.float32),
                            pltpu.VMEM((C, 1), jnp.float32)],
        ),
        compiler_params=pltpu.CompilerParams(
            dimension_semantics=("parallel", "arbitrary"),
            vmem_limit_bytes=int(vmem_limit)),
    )(x_flat, w1, b1c, w2, b2c)


def _scale_mul_kernel(x_ref, scale_ref, o_ref):
    o_ref[0] = x_ref[0] * scale_ref[0]        # (C, thw) * (C, 1)


def _scale_mul_call(x_flat, scale, thw, vmem_limit):
    N, C, HW = x_flat.shape
    num_hw = (HW + thw - 1) // thw
    return pl.pallas_call(
        _scale_mul_kernel,
        out_shape=jax.ShapeDtypeStruct((N, C, HW), x_flat.dtype),
        grid_spec=pltpu.PrefetchScalarGridSpec(
            num_scalar_prefetch=0,
            grid=(N, num_hw),
            in_specs=[
                pl.BlockSpec((1, C, thw), lambda n, h: (n, 0, h)),
                pl.BlockSpec((1, C, 1), lambda n, h: (n, 0, 0)),
            ],
            out_specs=pl.BlockSpec((1, C, thw), lambda n, h: (n, 0, h)),
        ),
        compiler_params=pltpu.CompilerParams(
            # Two parallel axes: keeps both v7x TensorCores busy even for N=1.
            dimension_semantics=("parallel", "parallel"),
            vmem_limit_bytes=int(vmem_limit)),
    )(x_flat, scale)


# ---------------------------------------------------------------------------
# Wrapper: path selection + VMEM budgeting.
# ---------------------------------------------------------------------------
def channel_attention(x_nchw, w1, b1, w2, b2, *, force_tiled=False, tile_hw=None):
    """x_nchw: (N, C, H, W) float32.  Returns (N, C, H, W)."""
    N, C, H, W = x_nchw.shape
    HW = H * W
    R = w1.shape[0]

    x_flat = x_nchw.reshape(N, C, HW)          # no padding, no extra HBM pass
    b1c = b1.reshape(R, 1)
    b2c = b2.reshape(C, 1)

    itemsize = jnp.dtype(x_nchw.dtype).itemsize
    Cp = _round_up(C, 8)
    # Padded VMEM footprints of the tiles Mosaic will actually allocate.
    slab_bytes = Cp * _round_up(HW, 128) * itemsize
    weight_bytes = (_round_up(R, 8) * _round_up(C, 128)      # w1
                    + _round_up(R, 8) * 128                  # b1
                    + Cp * _round_up(R, 128)                 # w2
                    + Cp * 128) * 4                          # b2
    margin = 4 << 20

    try:
        vmem_physical = int(pltpu.get_tpu_info().vmem_capacity_bytes)
    except Exception:
        vmem_physical = 64 << 20               # conservative (v7x per-TC) fallback
    vmem_budget = int(0.75 * vmem_physical)

    # Whole-slab working set: double-buffered in + out blocks + weights.
    whole_needed = 4 * slab_bytes + 2 * weight_bytes + margin

    if not force_tiled and whole_needed <= vmem_budget:
        limit = min(max(whole_needed, 32 << 20), vmem_budget)
        out_flat = _whole_slab_call(x_flat, w1, b1c, w2, b2c, limit)
    else:
        # HW-tiled two-pass fallback (extra read of x, but fits VMEM and
        # exposes a second parallel axis for the multiply pass).
        if tile_hw is not None:
            thw = int(tile_hw)
        else:
            target = min(24 << 20, vmem_budget // 2)
            thw = (target // (4 * Cp * itemsize)) // 128 * 128
            thw = max(128, min(4096, thw))
        if HW <= thw:
            thw = HW                           # single full-extent block (legal)

        tile_bytes = Cp * _round_up(thw, 128) * itemsize
        p1_limit = min(max(2 * tile_bytes + 2 * weight_bytes + margin, 32 << 20),
                       vmem_budget)
        p2_limit = min(max(4 * tile_bytes + margin, 32 << 20), vmem_budget)

        scale = _pool_scale_call(x_flat, w1, b1c, w2, b2c, thw, p1_limit)
        out_flat = _scale_mul_call(x_flat, scale, thw, p2_limit)

    return out_flat.reshape(N, C, H, W)


# ---------------------------------------------------------------------------
# Params init (mimics nn.Linear default) + plain-JAX reference + self-test.
# ---------------------------------------------------------------------------
def init_params(key, channels, reduction_ratio=16):
    reduced = max(1, channels // reduction_ratio)
    k1, k2, k3, k4 = jax.random.split(key, 4)
    bound1 = 1.0 / jnp.sqrt(channels)
    bound2 = 1.0 / jnp.sqrt(reduced)
    w1 = jax.random.uniform(k1, (reduced, channels), jnp.float32, -bound1, bound1)
    b1 = jax.random.uniform(k2, (reduced,), jnp.float32, -bound1, bound1)
    w2 = jax.random.uniform(k3, (channels, reduced), jnp.float32, -bound2, bound2)
    b2 = jax.random.uniform(k4, (channels,), jnp.float32, -bound2, bound2)
    return w1, b1, w2, b2


def reference(x, w1, b1, w2, b2):
    mx = jnp.max(x, axis=(2, 3))               # (N, C)
    av = jnp.mean(x, axis=(2, 3))              # (N, C)

    def mlp(p):
        h = jnp.maximum(p @ w1.T + b1, 0.0)
        return h @ w2.T + b2

    scale = jax.nn.sigmoid(mlp(mx) + mlp(av))[:, :, None, None]
    return x * scale


def _run_case(key, N, C, H, W, rr, **kw):
    kx, kp = jax.random.split(key)
    x = jax.random.normal(kx, (N, C, H, W), jnp.float32)
    w1, b1, w2, b2 = init_params(kp, C, rr)
    out = jax.block_until_ready(channel_attention(x, w1, b1, w2, b2, **kw))
    ref = reference(x, w1, b1, w2, b2)
    assert out.shape == (N, C, H, W)
    assert jnp.allclose(out, ref, atol=1e-5, rtol=1e-5), "mismatch vs reference"


if __name__ == "__main__":
    key = jax.random.PRNGKey(0)
    k1, k2, k3 = jax.random.split(key, 3)
    # Whole-slab path, lane-aligned spatial extent (HW = 256).
    _run_case(k1, N=2, C=4, H=16, W=16, rr=16)
    # Whole-slab path, unaligned spatial tail (HW = 25): masked tail only.
    _run_case(k2, N=2, C=8, H=5, W=5, rr=4)
    # Forced HW-tiled two-pass path: HW = 135, thw = 128 -> 2 tiles + 7-lane tail.
    _run_case(k3, N=2, C=8, H=9, W=15, rr=4, force_tiled=True, tile_hw=128)
    print("KERNEL_OK")
</pallas_src>

<mosaic_0001>
module attributes {stable_mosaic.version = 11 : i64} {
  func.func @kernel(%arg0: i32, %arg1: memref<1x4x256xf32, #tpu.memory_space<vmem>>, %arg2: memref<1x4xf32, #tpu.memory_space<vmem>>, %arg3: memref<1x1xf32, #tpu.memory_space<vmem>>, %arg4: memref<4x1xf32, #tpu.memory_space<vmem>>, %arg5: memref<4x1xf32, #tpu.memory_space<vmem>>, %arg6: memref<1x4x256xf32, #tpu.memory_space<vmem>>) attributes {dimension_semantics = [#tpu.dimension_semantics<parallel>], iteration_bounds = array<i64: 2>, scalar_prefetch = 0 : i64, scratch_operands = 0 : i64, tpu.core_type = #tpu.core_type<tc>, window_params = [{transform_indices = @transform_0, window_bounds = array<i64: 1, 4, 256>}, {pipeline_mode = #tpu.pipeline_mode<synchronous>, transform_indices = @transform_1, window_bounds = array<i64: 1, 4>}, {pipeline_mode = #tpu.pipeline_mode<synchronous>, transform_indices = @transform_2, window_bounds = array<i64: 1, 1>}, {pipeline_mode = #tpu.pipeline_mode<synchronous>, transform_indices = @transform_3, window_bounds = array<i64: 4, 1>}, {pipeline_mode = #tpu.pipeline_mode<synchronous>, transform_indices = @transform_4, window_bounds = array<i64: 4, 1>}, {transform_indices = @transform_5, window_bounds = array<i64: 1, 4, 256>}]} {
    %c0 = arith.constant 0 : index
    %c0_0 = arith.constant 0 : index
    %c0_1 = arith.constant 0 : index
    %0 = vector.load %arg1[%c0, %c0_0, %c0_1] : memref<1x4x256xf32, #tpu.memory_space<vmem>>, vector<1x4x256xf32>
    %1 = vector.shape_cast %0 : vector<1x4x256xf32> to vector<4x256xf32>
    %cst = arith.constant dense<0xFF800000> : vector<4xf32>
    %2 = vector.multi_reduction <maximumf>, %1, %cst [1] : vector<4x256xf32> to vector<4xf32>
    %3 = vector.shape_cast %2 : vector<4xf32> to vector<4x1xf32>
    %cst_2 = arith.constant dense<0.000000e+00> : vector<4xf32>
    %4 = vector.multi_reduction <add>, %1, %cst_2 [1] : vector<4x256xf32> to vector<4xf32>
    %5 = vector.shape_cast %4 : vector<4xf32> to vector<4x1xf32>
    %cst_3 = arith.constant 3.906250e-03 : f32
    %6 = vector.broadcast %cst_3 : f32 to vector<4x1xf32>
    %7 = arith.mulf %5, %6 : vector<4x1xf32>
    %c0_4 = arith.constant 0 : index
    %c0_5 = arith.constant 0 : index
    %8 = vector.load %arg2[%c0_4, %c0_5] : memref<1x4xf32, #tpu.memory_space<vmem>>, vector<1x4xf32>
    %cst_6 = arith.constant dense<0.000000e+00> : vector<1x1xf32>
    %9 = tpu.matmul %8, %3, %cst_6 {dimension_numbers = #tpu.dot_dimension_numbers<[1], [0], [0], [1], [0, 0, 1, 1], [], []>} : vector<1x4xf32>, vector<4x1xf32>, vector<1x1xf32> -> vector<1x1xf32>
    %c0_7 = arith.constant 0 : index
    %c0_8 = arith.constant 0 : index
    %10 = vector.load %arg3[%c0_7, %c0_8] : memref<1x1xf32, #tpu.memory_space<vmem>>, vector<1x1xf32>
    %11 = arith.addf %9, %10 : vector<1x1xf32>
    %cst_9 = arith.constant 0.000000e+00 : f32
    %12 = vector.broadcast %cst_9 : f32 to vector<1x1xf32>
    %13 = arith.maximumf %11, %12 : vector<1x1xf32>
    %c0_10 = arith.constant 0 : index
    %c0_11 = arith.constant 0 : index
    %14 = vector.load %arg2[%c0_10, %c0_11] : memref<1x4xf32, #tpu.memory_space<vmem>>, vector<1x4xf32>
    %cst_12 = arith.constant dense<0.000000e+00> : vector<1x1xf32>
    %15 = tpu.matmul %14, %7, %cst_12 {dimension_numbers = #tpu.dot_dimension_numbers<[1], [0], [0], [1], [0, 0, 1, 1], [], []>} : vector<1x4xf32>, vector<4x1xf32>, vector<1x1xf32> -> vector<1x1xf32>
    %c0_13 = arith.constant 0 : index
    %c0_14 = arith.constant 0 : index
    %16 = vector.load %arg3[%c0_13, %c0_14] : memref<1x1xf32, #tpu.memory_space<vmem>>, vector<1x1xf32>
    %17 = arith.addf %15, %16 : vector<1x1xf32>
    %cst_15 = arith.constant 0.000000e+00 : f32
    %18 = vector.broadcast %cst_15 : f32 to vector<1x1xf32>
    %19 = arith.maximumf %17, %18 : vector<1x1xf32>
    %c0_16 = arith.constant 0 : index
    %c0_17 = arith.constant 0 : index
    %20 = vector.load %arg4[%c0_16, %c0_17] : memref<4x1xf32, #tpu.memory_space<vmem>>, vector<4x1xf32>
    %21 = arith.addf %13, %19 : vector<1x1xf32>
    %cst_18 = arith.constant dense<0.000000e+00> : vector<4x1xf32>
    %22 = tpu.matmul %20, %21, %cst_18 {dimension_numbers = #tpu.dot_dimension_numbers<[1], [0], [0], [1], [0, 0, 1, 1], [], []>} : vector<4x1xf32>, vector<1x1xf32>, vector<4x1xf32> -> vector<4x1xf32>
    %c0_19 = arith.constant 0 : index
    %c0_20 = arith.constant 0 : index
    %23 = vector.load %arg5[%c0_19, %c0_20] : memref<4x1xf32, #tpu.memory_space<vmem>>, vector<4x1xf32>
    %cst_21 = arith.constant 2.000000e+00 : f32
    %24 = vector.broadcast %cst_21 : f32 to vector<4x1xf32>
    %25 = arith.mulf %24, %23 : vector<4x1xf32>
    %26 = arith.addf %22, %25 : vector<4x1xf32>
    %27 = arith.negf %26 : vector<4x1xf32>
    %28 = math.exp %27 : vector<4x1xf32>
    %cst_22 = arith.constant 1.000000e+00 : f32
    %29 = vector.broadcast %cst_22 : f32 to vector<4x1xf32>
    %30 = arith.addf %29, %28 : vector<4x1xf32>
    %31 = arith.divf %29, %30 : vector<4x1xf32>
    %32 = vector.broadcast %31 : vector<4x1xf32> to vector<4x256xf32>
    %33 = arith.mulf %1, %32 : vector<4x256xf32>
    %c0_23 = arith.constant 0 : index
    %c0_24 = arith.constant 0 : index
    %c0_25 = arith.constant 0 : index
    %34 = vector.load %arg6[%c0_23, %c0_24, %c0_25] : memref<1x4x256xf32, #tpu.memory_space<vmem>>, vector<1x4x256xf32>
    %35 = vector.shape_cast %34 : vector<1x4x256xf32> to vector<4x256xf32>
    %36 = vector.shape_cast %33 : vector<4x256xf32> to vector<1x4x256xf32>
    tpu.vector_store %arg6[%c0_23, %c0_24, %c0_25], %36 {strides = array<i32>} : memref<1x4x256xf32, #tpu.memory_space<vmem>>, vector<1x4x256xf32>,
    return
  }
  func.func @transform_0(%arg0: i32) -> (i32, i32, i32) {
    %c0_i32 = arith.constant 0 : i32
    %c0_i32_0 = arith.constant 0 : i32
    %c0_i32_1 = arith.constant 0 : i32
    return %arg0, %c0_i32, %c0_i32_0 : i32, i32, i32
  }
  func.func @transform_1(%arg0: i32) -> (i32, i32) {
    %c0_i32 = arith.constant 0 : i32
    %c0_i32_0 = arith.constant 0 : i32
    %c0_i32_1 = arith.constant 0 : i32
    return %c0_i32, %c0_i32_0 : i32, i32
  }
  func.func @transform_2(%arg0: i32) -> (i32, i32) {
    %c0_i32 = arith.constant 0 : i32
    %c0_i32_0 = arith.constant 0 : i32
    %c0_i32_1 = arith.constant 0 : i32
    return %c0_i32, %c0_i32_0 : i32, i32
  }
  func.func @transform_3(%arg0: i32) -> (i32, i32) {
    %c0_i32 = arith.constant 0 : i32
    %c0_i32_0 = arith.constant 0 : i32
    %c0_i32_1 = arith.constant 0 : i32
    return %c0_i32, %c0_i32_0 : i32, i32
  }
  func.func @transform_4(%arg0: i32) -> (i32, i32) {
    %c0_i32 = arith.constant 0 : i32
    %c0_i32_0 = arith.constant 0 : i32
    %c0_i32_1 = arith.constant 0 : i32
    return %c0_i32, %c0_i32_0 : i32, i32
  }
  func.func @transform_5(%arg0: i32) -> (i32, i32, i32) {
    %c0_i32 = arith.constant 0 : i32
    %c0_i32_0 = arith.constant 0 : i32
    %c0_i32_1 = arith.constant 0 : i32
    return %arg0, %c0_i32, %c0_i32_0 : i32, i32, i32
  }
}

</mosaic_0001>

<bundles_post_ra>
// kernel: tpu_custom_call.1
= control target key start
LH: loop header
LB: loop body
LE: loop exit
PB: predicated region body
PF: predicated region fallthrough
CT: control target
= control target key end

     0   :  { %s1001_s0 = inlined_call_operand.hbm [shape: f32[2,4,256], index: 0, kind: input, shape index: {}]   ;;  %s1002_s1 = inlined_call_operand.vmem [shape: f32[1,4], index: 1, kind: input, shape index: {}]   ;;  %s1003_s2 = inlined_call_operand.<no memory space> [shape: f32[1,1], index: 2, kind: input, shape index: {}]   ;;  %s1004_s3 = inlined_call_operand.vmem [shape: f32[4,1], index: 3, kind: input, shape index: {}]   ;;  %s1005_s4 = inlined_call_operand.vmem [shape: f32[4,1], index: 4, kind: input, shape index: {}]   ;;  %s1006_s5 = inlined_call_operand.hbm [shape: f32[2,4,256], index: 5, kind: output, shape index: {}]  }
   0x1   :  { %v10_v0 = vstv %s1003_s2 }
   0x2   :  { %11 = vst [vmem:[#allocation2] sm:$0x1] %v10_v0 }
   0x3   :  { %12 = vsyncpa [#allocation4], 0 }
   0x4   :  { %14 = vsyncpa [#allocation4 + $0x1], 0 }
   0x5   :  { %15 = vsyncpa [#allocation5], 0 }
   0x6   :  { %17 = vsyncpa [#allocation5 + $0x1], 0  ;;  %s834_s20 = smov 0   ;;  %s836_s21 = smov 0  }
   0x7   :  { %s838_s22 = smov 0   ;;  %s840_s23 = smov 0  }
   0x8 LB: > { %s855_s2 = sadd.s32 4294967295, %s793_s23   ;;  %s600_s24 = sadd.s32 4294967294, %s793_s23   ;;  %s793_s23 = sphi %s840_s23, %s1023_s23   ;;  %s789_s22 = sphi %s838_s22, %s1022_s22   ;;  %s785_s21 = sphi %s836_s21, %s1021_s21   ;;  %s781_s20 = sphi %s834_s20, %s1020_s20  }
   0x9   : > { %s859_s25 = sadd.s32 1, %s793_s23   ;;  %s30_s26 = sadd.s32 1, %s789_s22 }
   0xa   : > { %s27_s27 = ssub.s32 %s793_s23, %s859_s25  ;;  %p37_p0 = scmp.ne.s32.totalorder %s789_s22, %s785_s21 }
   0xb   : > { %p28_p1 = scmp.eq.s32.totalorder %s27_s27, 0  ;;  %p38_p2 = scmp.eq.s32.totalorder %s793_s23, 0 }
   0xc   : > { %p43_p3 = scmp.ne.s32.totalorder %s785_s21, %s781_s20  ;;  %p44_p4 = scmp.eq.s32.totalorder %s855_s2, 0 }
   0xd   : > { %s871_s28 = scalar_select %p28_p1, %s789_s22, %s30_s26  }
   0xe   : > { %p873_p5 = por %p38_p2, %p37_p0  ;;  %p877_p6 = por %p44_p4, %p43_p3 }
   0xf   : > { %p151_p7 = scmp.eq.s32.totalorder %s855_s2, 1  ;;  %p157_p8 = scmp.eq.s32.totalorder %s600_s24, 1 }
  0x10   : > { %s1010_s30 = scalar_select %p877_p6, 1, 0 }
  0x11   : > { %p656_p10 = scmp.lt.s32.totalorder %s793_s23, 2  ;;  %p884_p11 = por %p151_p7, %p37_p0 }
  0x12   : > { %p888_p12 = por %p157_p8, %p43_p3  ;;  %s189_s8 = sand.u32 1, %s789_s22  }
  0x13   : > { %s1011_s6 = scalar_select %p884_p11, 1, 0 }
  0x14   : > { %s1012_s7 = scalar_select %p888_p12, 1, 0 }
  0x15   : > { %s621_s9 = sshll.u32 %s793_s23, 7  ;;  %s603_s10 = sshll.u32 %s189_s8, 3 }
  0x16   : > { %s897_s13 = scalar_lea.hbm %s1001_s0, %s621_s9  ;;  %s193_s14 = scalar_lea.vmem [#allocation3], %s603_s10 }
  0x17   : > { %s201_s15 = sshll.u32 %s193_s14, 4  ;;  %p901_p13 = pnand %p656_p10, %p873_p5  ;;  %s905_s15 = int_to_ptr.vmem [resolvable:$true] %s201_s15 }
  0x18   : > { %s190_s17 = scalar_lea.sflag [#allocation4], %s189_s8  ;;  %s701_s18 = scalar_lea.hbm %s897_s13, 128 }
  0x19   : > { %p702_p2 = scmp.ne.s32.totalorder %s897_s13, %s701_s18  ;;  %p703_p3 = pneg %p901_p13 }
  0x1a   : > { %s706_s26 = scalar_lea.hbm %s1001_s0, 256  ;;  %p707_p5 = scmp.lt.s32.totalorder %s897_s13, %s1001_s0 }
  0x1b   : > { %p704_p4 = pnand %p703_p3, %p702_p2  ;;  %p708_p8 = scmp.lt.s32.totalorder %s706_s26, %s701_s18 }
  0x1d   : > { %p705_p7 = pneg %p704_p4  ;;  %p709_p10 = por %p708_p8, %p707_p5 }
  0x1f   : > { %p710_p9 = pnand %p709_p10, %p705_p7 }
  0x21   : > { %713 = shalt.err (!%p710_p9)
}
  0x22   : > { %s714_s8 = scalar_lea.vmem %s905_s15, 128  ;;  %s795_s9 = smov [#allocation3]  }
  0x23   : > { %p715_p0 = scmp.ne.s32.totalorder %s905_s15, %s714_s8  ;;  %s719_s10 = sshll.u32 %s795_s9, 4  ;;  %s720_s10 = int_to_ptr.vmem [resolvable:$false] %s719_s10 }
  0x24   : > { %s721_s11 = scalar_lea.vmem %s720_s10, 256  ;;  %p722_p4 = scmp.lt.s32.totalorder %s905_s15, %s720_s10 }
  0x25   : > { %p717_p1 = pnand %p715_p0, %p703_p3  ;;  %p723_p12 = scmp.lt.s32.totalorder %s721_s11, %s714_s8 }
  0x27   : > { %p718_p2 = pneg %p717_p1  ;;  %p724_p11 = por %p723_p12, %p722_p4 }
  0x29   : > { %p725_p6 = pnand %p724_p11, %p718_p2 }
  0x2b   : > { %728 = shalt.err (!%p725_p6)
}
  0x2c   : > { %651 = dma.hbm_to_vmem [thread:$0]  (!%p901_p13), %s897_s13, 128, %s905_s15, %s190_s17  }
  0x2d   : > { %p1014_p9 = scmp.lt.s32.totalorder %s793_s23, 3  ;;  %p1015_p7 = scmp.ge.s32.totalorder %s793_s23, 1 }
  0x2f   : > { %p207_p0 = pnand %p1015_p7, %p1014_p9 }
  0x30   : > { %s932_s12 = sand.u32 (!%p207_p0), 1, %s785_s21   ;;  %p1016_p6 = scmp.ne.s32.totalorder (!%p207_p0), %s1010_s30, 0 }
  0x31   : > { %210 = sbr.rel (%p207_p0) target bundleno = 772 (0x304), region = 40  ;;  %s607_s14 = sshll.u32 (!%p207_p0), %s932_s12, 3 }
  0x32   : > { %s213_s18 = scalar_lea.sflag (!%p207_p0), [#allocation4], %s932_s12  ;;  %s216_s16 = scalar_lea.vmem (!%p207_p0), [#allocation3], %s607_s14 }
  0x36   : > { %772 = dma.done.wait (%p1016_p6), %s213_s18, 128  }
  0x37   : > { %774 = vsyncadd (%p1016_p6), %s213_s18, 4294967168  ;;  %vm247_vm0 = vcmask 1043456   ;;  %v942_v1 = vld [vmem:[%s216_s16] sm:$0xff]  ;;  %v796_v9 = vmov 0.0   ;;  %vm797_vm1 = vmmov 0   ;;  %vm261_vm2 = vcmask 31744  }
  0x38   : > { %v245_v2 = vcombine.high %v942_v1, %v942_v1  ;;  %v253_v3 = vsel %vm247_vm0, %v942_v1, 0.0  ;;  %v248_v5 = vsel %vm247_vm0, %v942_v1, -inf  ;;  %634 = vmatprep.subr.mxu1 %v796_v9  ;;  %629 = vmatprep.subr.mxu0 %v796_v9  ;;  %v259_v12 = vld [vmem:[%s1002_s1] sm:$0x1]  ;;  %vm421_vm3 = vcmask 1040384   ;;  %s622_s26 = sshll.u32 %s855_s2, 7 }
  0x39   : > { %636 = vmatprep.mubr.msk.f32.mxu1 %vm797_vm1, %v796_v9  ;;  %631 = vmatprep.mubr.msk.f32.mxu0 %vm797_vm1, %v796_v9  ;;  %v260_v14 = vld [vmem:[#allocation2] sm:$0x1]  ;;  %vm417_vm4 = vcmask 7168   ;;  %v798_v25 = vmov 0   ;;  %v799_v35 = vmov 839922192   ;;  %v508_v37 = vlaneseq  ;;  %s528_s10 = scalar_lea.hbm %s1006_s5, %s622_s26 }
  0x3a   : > { %v254_v4 = vsel %vm247_vm0, %v245_v2, 0.0  ;;  %v249_v6 = vsel %vm247_vm0, %v245_v2, -inf  ;;  %v413_v24 = vld [vmem:[%s1004_s3] sm:$0xf]  ;;  %694 = vset.pattern.permute.xlu1 %v798_v25  ;;  %695 = vset.pattern.permute.xlu0 %v798_v25  ;;  %v506_v36 = vunpack.c.l.s4 %v799_v35  ;;  %s242_s27 = scalar_lea.vmem [#allocation6], %s607_s14  ;;  %s516_s11 = scalar_lea.sflag [#allocation5], %s932_s12 }
  0x3b   : > { %v255_v7 = vadd.f32 %v254_v4, %v253_v3  ;;  %v250_v8 = vmax.f32 %v248_v5, %v249_v6  ;;  %v415_v26 = vld [vmem:[%s1005_s4] sm:$0xf]  ;;  %v509_v39 = vshrl.u32 %v508_v37, 7  ;;  %s530_s29 = sshll.u32 %s242_s27, 4  ;;  %p1017_p12 = scmp.ne.s32.totalorder %s1011_s6, 0  ;;  %s531_s29 = int_to_ptr.vmem [resolvable:$true] %s530_s29 }
  0x3c   : > { %v416_v27 = vmul.f32 2.0, %v415_v26  ;;  %v507_v38 = vunpack.c.0.s8 %v506_v36  ;;  %s729_s18 = scalar_lea.vmem %s531_s29, 128  ;;  %s800_s16 = smov [#allocation6]  }
  0x3d   : > { %256 = vadd.xlane.f32.xlu0 %v255_v7  ;;  %p730_p11 = scmp.ne.s32.totalorder %s531_s29, %s729_s18  ;;  %s733_s2 = sshll.u32 %s800_s16, 4  ;;  %s734_s2 = int_to_ptr.vmem [resolvable:$false] %s733_s2 }
  0x3e   : > { %v510_v40 = vsub.s32 %v507_v38, %v509_v39  ;;  %s735_s14 = scalar_lea.vmem %s734_s2, 256  ;;  %p736_p3 = scmp.lt.s32.totalorder %s531_s29, %s734_s2 }
  0x3f   : > { %p731_p13 = pnand %p730_p11, %p1017_p12  ;;  %p737_p5 = scmp.lt.s32.totalorder %s735_s14, %s729_s18 }
  0x41   : > { %251 = vmax.xlane.f32.xlu0 %v250_v8  ;;  %p732_p1 = pneg %p731_p13  ;;  %p738_p8 = por %p737_p5, %p736_p3 }
  0x43   : > { %p739_p10 = pnand %p738_p8, %p732_p1 }
  0xc6   : > { %v257_v10 = vpop.xlane.xlu0 %256 }
  0xc7   : > { %v258_v11 = vmul.f32 0.00390625, %v257_v10 }
  0xc9   : > { %635 = vmatpush3.msk.msra.mxu1 %vm247_vm0, %v258_v11 }
  0xca   : > { %637 = vmatmul.mubr.msk.f32.vlgmr.msra.gmra.mxu1 %vm261_vm2, %v259_v12  ;;  %v252_v13 = vpop.xlane.xlu0 %251 }
  0xcb   : > { %630 = vmatpush3.msk.msra.mxu0 %vm247_vm0, %v252_v13 }
  0xcc   : > { %632 = vmatmul.mubr.msk.f32.vlgmr.msra.gmra.mxu0 %vm261_vm2, %v259_v12  ;;  %639 = vmatprep.subr.mxu0 %v796_v9 }
  0xcd   : > { %641 = vmatprep.mubr.msk.f32.mxu0 %vm797_vm1, %v796_v9 }
 0x18a   : > { %v408_v15 = vpop.f32.mrf.mxu1 }
 0x18b   : > { %v409_v16 = vadd.f32 %v408_v15, %v260_v14 }
 0x18c   : > { %v334_v17 = vpop.f32.mrf.mxu0  ;;  %v638_v18 = vpop.f32.mrf.mxu1 }
 0x18d   : > { %v412_v19 = vmax.f32 %v409_v16, 0.0  ;;  %v335_v20 = vadd.f32 %v334_v17, %v260_v14 }
 0x18e   : > { %v633_v21 = vpop.f32.mrf.mxu0 }
 0x18f   : > { %v338_v22 = vmax.f32 %v335_v20, 0.0 }
 0x191   : > { %v414_v23 = vadd.f32 %v412_v19, %v338_v22 }
 0x193   : > { %640 = vmatpush3.msk.msra.mxu0 %vm421_vm3, %v414_v23 }
 0x194   : > { %642 = vmatmul.mubr.msk.f32.vlgmr.msra.gmra.mxu0 %vm417_vm4, %v413_v24 }
 0x254   : > { %v491_v28 = vpop.f32.mrf.mxu0 }
 0x255   : > { %v492_v29 = vadd.f32 %v491_v28, %v416_v27 }
 0x256   : > { %v643_v30 = vpop.f32.mrf.mxu0 }
 0x257   : > { %v615_v31 = vmul.f32 -1.442695, %v492_v29 }
 0x259   : > { %697 = vpow2.f32 %v615_v31 }
 0x266   : > { %v698_v32 = vpop.eup %697 }
 0x267   : > { %v498_v33 = vadd.f32 1.0, %v698_v32 }
 0x269   : > { %699 = vrcp.f32 %v498_v33 }
 0x276   : > { %v700_v34 = vpop.eup %699 }
 0x277   : > { %503 = vperm.xlu1 %694, %v700_v34  }
 0x2f2   : > { %v504_v41 = vpop.permute.xlu1 %503 }
 0x2f3   : > { %v511_v42 = vrot.slane %v504_v41, %v510_v40 }
 0x2f5   : > { %v513_v43 = vmul.f32 %v511_v42, %v942_v1 }
 0x2f7   : > { %514 = vst [vmem:[%s242_s27] sm:$0xff] %v513_v43 }
 0x2f8   : > { %742 = shalt.err (!%p739_p10)
}
 0x2f9   : > { %s743_s30 = scalar_lea.hbm %s528_s10, 128  ;;  %s747_s15 = scalar_lea.hbm %s1006_s5, 256 }
 0x2fa   : > { %p744_p2 = scmp.ne.s32.totalorder %s528_s10, %s743_s30  ;;  %p748_p7 = scmp.lt.s32.totalorder %s528_s10, %s1006_s5 }
 0x2fb   : > { %p749_p0 = scmp.lt.s32.totalorder %s747_s15, %s743_s30 }
 0x2fc   : > { %p745_p4 = pnand %p744_p2, %p1017_p12 }
 0x2fd   : > { %p750_p6 = por %p749_p0, %p748_p7 }
 0x2fe   : > { %p746_p9 = pneg %p745_p4 }
 0x300   : > { %p751_p11 = pnand %p750_p6, %p746_p9 }
 0x302   : > { %754 = shalt.err (!%p751_p11)
}
 0x303   : > { %646 = dma.vmem_to_hbm [thread:$0]  (%p1017_p12), %s531_s29, 128, %s528_s10, %s516_s11  }
 0x304 PF: > { %s542_s24 = sand.u32 1, %s781_s20   ;;  %p1018_p13 = scmp.ne.s32.totalorder %s1012_s7, 0 }
 0x305   : > { %p1019_p1 = scmp.ge.s32.totalorder %s793_s23, 2  ;;  %s543_s26 = scalar_lea.sflag [#allocation5], %s542_s24 }
 0x307   : > { %p653_p3 = pnand %p1019_p1, %p1018_p13 }
 0x309   : > { %p654_p5 = pneg %p653_p3 }
 0x30b   : > { %776 = dma.done.wait (%p654_p5), %s543_s26, 128  }
 0x30c   : > { %778 = vsyncadd (%p654_p5), %s543_s26, 4294967168  ;;  %p20_p8 = scmp.ge.s32.totalorder %s859_s25, 4   ;;  %s1020_s20 = smov %s785_s21 }
 0x30d   : > { %s1021_s21 = smov %s789_s22  ;;  %s1022_s22 = smov %s871_s28 }
 0x30e   : > { %s1023_s23 = smov %s859_s25  ;;  %22 = sbr.rel (!%p20_p8) target bundleno = 8 (0x8), region = 85 }
 0x313   :  { %548 = vsyncpa [#allocation4], 1 }
 0x314   :  { %550 = vsyncpa [#allocation4 + $0x1], 1 }
 0x315   :  { %551 = vsyncpa [#allocation5], 1 }
 0x316   :  { %553 = vsyncpa [#allocation5 + $0x1], 1 }

</bundles_post_ra>
